<compile_context>
chip_gen: v7x
topology: tpu7x:2x2x1
jax: 0.10.0
libtpu: 0.0.40
codegen_flags: <defaults>
</compile_context>

<pallas_src>
import jax
import jax.numpy as jnp
from jax.experimental import pallas as pl
from jax.experimental.pallas import tpu as pltpu


def _round_up(n, m):
    return ((n + m - 1) // m) * m


def _tpu_kind():
    try:
        return jax.devices()[0].device_kind.lower()
    except Exception:
        return ""


def _vmem_capacity_bytes():
    try:
        return int(pltpu.get_tpu_info().vmem_capacity_bytes)
    except Exception:
        return 64 * 1024 * 1024  # conservative (v7x per-TC)


# -----------------------------------------------------------------------------
# Kernels
# -----------------------------------------------------------------------------
def _classnet_kernel_split(x_ref, y_ref, w1_ref, b1_ref, w12_ref, b12_ref,
                           w2_ref, b2_ref, w3_ref, b3_ref, out_ref):
    """Two separate 128-wide branch matmuls (best fit for v5e's 128x128 MXU)."""
    h1 = jnp.dot(x_ref[...], w1_ref[...],
                 preferred_element_type=jnp.float32) + b1_ref[...]
    h1 = jnp.maximum(h1, 0.0)            # relu (dropout is identity at inference)

    h2 = jnp.dot(y_ref[...], w12_ref[...],
                 preferred_element_type=jnp.float32) + b12_ref[...]
    h2 = jnp.maximum(h2, 0.0)

    h = (h1 + h2).astype(w2_ref.dtype)
    h = jnp.dot(h, w2_ref[...],
                preferred_element_type=jnp.float32) + b2_ref[...]
    h = jnp.maximum(h, 0.0).astype(w3_ref.dtype)

    out_ref[...] = (jnp.dot(h, w3_ref[...], preferred_element_type=jnp.float32)
                    + b3_ref[...]).astype(out_ref.dtype)


def _classnet_kernel_fused(x_ref, y_ref, wb_ref, bb_ref, w2_ref, b2_ref,
                           w3_ref, b3_ref, out_ref):
    """Block-diagonal branch fusion: one 256-wide MXU pass yields [h1 | h2]."""
    xy = jnp.concatenate([x_ref[...], y_ref[...]], axis=-1)        # (tm, 2*in)
    h = jnp.dot(xy, wb_ref[...],
                preferred_element_type=jnp.float32) + bb_ref[...]  # (tm, 2*base)
    h = jnp.maximum(h, 0.0)              # relu applied per-half BEFORE the add
    base = h.shape[-1] // 2
    h = (h[:, :base] + h[:, base:]).astype(w2_ref.dtype)

    h = jnp.dot(h, w2_ref[...],
                preferred_element_type=jnp.float32) + b2_ref[...]
    h = jnp.maximum(h, 0.0).astype(w3_ref.dtype)

    out_ref[...] = (jnp.dot(h, w3_ref[...], preferred_element_type=jnp.float32)
                    + b3_ref[...]).astype(out_ref.dtype)


# -----------------------------------------------------------------------------
# One-time parameter preparation (hoisted out of the per-call path)
# -----------------------------------------------------------------------------
def prepare_params(params, *, fuse_branches=None, mxu_dtype=jnp.bfloat16):
    w1, b1, w12, b12, w2, b2, w3, b3 = params
    in_features, base = w1.shape
    num_classes = w3.shape[1]

    if fuse_branches is None:
        kind = _tpu_kind()
        # 256x256 MXU generations (v6e/v7x) benefit from the block-diagonal
        # fusion; v2-v5 (128x128 MXU) keep the separate branch matmuls.
        fuse_branches = not any(g in kind for g in ("v2", "v3", "v4", "v5"))

    # Narrow fc3 padding: 8 output lanes, stored as a full-array-dim block.
    n_out = max(_round_up(num_classes, 8), 8)
    w3p = jnp.zeros((base, n_out), w3.dtype).at[:, :num_classes].set(w3)
    b3p = jnp.zeros((1, n_out), b3.dtype).at[:, :num_classes].set(b3)

    if fuse_branches:
        wb = jnp.zeros((2 * in_features, 2 * base), w1.dtype)
        wb = wb.at[:in_features, :base].set(w1)
        wb = wb.at[in_features:, base:].set(w12)
        bb = jnp.concatenate([b1, b12], axis=1)
        weights = (wb.astype(mxu_dtype), bb,
                   w2.astype(mxu_dtype), b2,
                   w3p.astype(mxu_dtype), b3p)
    else:
        weights = (w1.astype(mxu_dtype), b1,
                   w12.astype(mxu_dtype), b12,
                   w2.astype(mxu_dtype), b2,
                   w3p.astype(mxu_dtype), b3p)

    return dict(fused=fuse_branches, weights=weights, mxu_dtype=mxu_dtype,
                in_features=in_features, base=base,
                num_classes=num_classes, n_out=n_out)


# -----------------------------------------------------------------------------
# Forward
# -----------------------------------------------------------------------------
def _pick_tile_rows(B, in_features, base, n_out, fused, block_rows, num_tc):
    itemsize = 2  # bf16 tiles
    # Per-row VMEM: double-buffered x/y/out tiles + f32 intermediates.
    per_row = 2 * (2 * in_features * itemsize)      # x and y, 2 buffers each
    per_row += 2 * n_out * itemsize                 # out, 2 buffers
    per_row += 4 * (4 * base)                       # f32 intermediates (headroom)
    # Resident weights/biases.
    w_bytes = ((2 * in_features) * (2 * base) if fused
               else 2 * in_features * base) * itemsize
    w_bytes += (base * base + base * n_out) * itemsize
    w_bytes += (2 * base + base + n_out) * 4

    budget = int(_vmem_capacity_bytes() * 0.6) - w_bytes
    tm_cap = max(budget // per_row, 16)

    tm = max(16, min(block_rows, tm_cap, _round_up(B, 16)))
    tm = _round_up(tm, 16)
    # v7x: 2 TensorCores -> keep at least 2 "parallel" grid steps when possible.
    if num_tc > 1 and B > 2 * 16:
        tm = min(tm, _round_up(pl.cdiv(B, num_tc), 16))
    # Rebalance tm across the implied step count to shave batch-padding waste.
    steps = pl.cdiv(B, tm)
    tm = _round_up(pl.cdiv(B, steps), 16)
    return tm


def classnet_linear_forward(x, y, prepared, *, block_rows=4096):
    """x, y: any shape with leading batch dim; flattened to [B, in_features].

    Returns bf16 logits of shape [B, num_classes]; upcast if f32 is needed.
    """
    B = x.shape[0]
    x2 = x.reshape(B, -1)
    y2 = y.reshape(B, -1)

    in_features = prepared["in_features"]
    base = prepared["base"]
    n_out = prepared["n_out"]
    num_classes = prepared["num_classes"]
    assert x2.shape[1] == in_features and y2.shape[1] == in_features

    kind = _tpu_kind()
    num_tc = 2 if "v7" in kind else 1
    tm = _pick_tile_rows(B, in_features, base, n_out, prepared["fused"],
                         block_rows, num_tc)
    bp = _round_up(B, tm)
    if bp != B:
        x2 = jnp.pad(x2, ((0, bp - B), (0, 0)))
        y2 = jnp.pad(y2, ((0, bp - B), (0, 0)))

    mxu_dtype = prepared["mxu_dtype"]
    x2 = x2.astype(mxu_dtype)
    y2 = y2.astype(mxu_dtype)

    weights = prepared["weights"]
    kernel = _classnet_kernel_fused if prepared["fused"] else _classnet_kernel_split

    grid = (bp // tm,)

    def resident(arr):
        # Same block every grid step -> stays parked in VMEM.
        return pl.BlockSpec(arr.shape, lambda i: (0, 0))

    in_specs = ([pl.BlockSpec((tm, in_features), lambda i: (i, 0)),   # x tile
                 pl.BlockSpec((tm, in_features), lambda i: (i, 0))]   # y tile
                + [resident(w) for w in weights])
    out_specs = pl.BlockSpec((tm, n_out), lambda i: (i, 0))

    itemsize = jnp.dtype(mxu_dtype).itemsize
    flops = 2 * bp * (2 * in_features * base + base * base + base * n_out)
    bytes_accessed = (2 * bp * in_features * itemsize
                      + sum(int(w.size) * w.dtype.itemsize for w in weights)
                      + bp * n_out * itemsize)

    vmem_limit = min(int(_vmem_capacity_bytes() * 3 // 4), 100 * 1024 * 1024)

    out = pl.pallas_call(
        kernel,
        out_shape=jax.ShapeDtypeStruct((bp, n_out), mxu_dtype),
        grid_spec=pl.GridSpec(grid=grid, in_specs=in_specs, out_specs=out_specs),
        compiler_params=pltpu.CompilerParams(
            dimension_semantics=("parallel",),
            vmem_limit_bytes=vmem_limit,
        ),
        cost_estimate=pl.CostEstimate(
            flops=flops, transcendentals=0, bytes_accessed=bytes_accessed),
    )(x2, y2, *weights)

    return out[:B, :num_classes]


# -----------------------------------------------------------------------------
# Parameter init (PyTorch Linear default init, weights stored as [in, out])
# -----------------------------------------------------------------------------
def init_params(key, in_channels=128, base_channels=128, num_classes=5):
    ks = jax.random.split(key, 8)

    def lin(kw, kb, fan_in, fan_out):
        bound = 1.0 / jnp.sqrt(fan_in)
        w = jax.random.uniform(kw, (fan_in, fan_out), jnp.float32, -bound, bound)
        b = jax.random.uniform(kb, (1, fan_out), jnp.float32, -bound, bound)
        return w, b

    w1, b1 = lin(ks[0], ks[1], in_channels, base_channels)
    w12, b12 = lin(ks[2], ks[3], in_channels, base_channels)
    w2, b2 = lin(ks[4], ks[5], base_channels, base_channels)
    w3, b3 = lin(ks[6], ks[7], base_channels, num_classes)
    return (w1, b1, w12, b12, w2, b2, w3, b3)


def reference_forward(x, y, params):
    w1, b1, w12, b12, w2, b2, w3, b3 = params
    B = x.shape[0]
    x = x.reshape(B, -1)
    y = y.reshape(B, -1)
    hx = jax.nn.relu(x @ w1 + b1)
    hy = jax.nn.relu(y @ w12 + b12)
    h = jax.nn.relu((hx + hy) @ w2 + b2)
    return h @ w3 + b3


if __name__ == "__main__":
    key = jax.random.PRNGKey(0)
    kx, ky, kp = jax.random.split(key, 3)

    B, in_channels, base_channels, num_classes = 8, 128, 128, 5
    # Inputs with trailing dims; forward flattens to [B, in_channels].
    x = jax.random.normal(kx, (B, 8, 16), jnp.float32)
    y = jax.random.normal(ky, (B, 8, 16), jnp.float32)
    params = init_params(kp, in_channels, base_channels, num_classes)
    ref = reference_forward(x, y, params)

    # Exercise both MXU paths: fused block-diagonal (v6e/v7x) and split (v5e).
    for fuse in (True, False):
        prepared = prepare_params(params, fuse_branches=fuse)
        out = classnet_linear_forward(x, y, prepared)
        out = jax.block_until_ready(out)
        assert out.shape == (B, num_classes)
        # bf16 MXU operands + bf16 logit store (f32 accumulate) -> small drift.
        err = float(jnp.max(jnp.abs(out.astype(jnp.float32) - ref)))
        assert err < 5e-2, (fuse, err)

    print("KERNEL_OK")
</pallas_src>

<mosaic_0001>
module attributes {stable_mosaic.version = 11 : i64} {
  func.func @_classnet_kernel_fused(%arg0: i32, %arg1: memref<16x128xbf16, #tpu.memory_space<vmem>>, %arg2: memref<16x128xbf16, #tpu.memory_space<vmem>>, %arg3: memref<256x256xbf16, #tpu.memory_space<vmem>>, %arg4: memref<1x256xf32, #tpu.memory_space<vmem>>, %arg5: memref<128x128xbf16, #tpu.memory_space<vmem>>, %arg6: memref<1x128xf32, #tpu.memory_space<vmem>>, %arg7: memref<128x8xbf16, #tpu.memory_space<vmem>>, %arg8: memref<1x8xf32, #tpu.memory_space<vmem>>, %arg9: memref<16x8xbf16, #tpu.memory_space<vmem>>) attributes {dimension_semantics = [#tpu.dimension_semantics<parallel>], iteration_bounds = array<i64: 1>, scalar_prefetch = 0 : i64, scratch_operands = 0 : i64, tpu.core_type = #tpu.core_type<tc>, window_params = [{transform_indices = @transform_0, window_bounds = array<i64: 16, 128>}, {transform_indices = @transform_1, window_bounds = array<i64: 16, 128>}, {pipeline_mode = #tpu.pipeline_mode<synchronous>, transform_indices = @transform_2, window_bounds = array<i64: 256, 256>}, {pipeline_mode = #tpu.pipeline_mode<synchronous>, transform_indices = @transform_3, window_bounds = array<i64: 1, 256>}, {pipeline_mode = #tpu.pipeline_mode<synchronous>, transform_indices = @transform_4, window_bounds = array<i64: 128, 128>}, {pipeline_mode = #tpu.pipeline_mode<synchronous>, transform_indices = @transform_5, window_bounds = array<i64: 1, 128>}, {pipeline_mode = #tpu.pipeline_mode<synchronous>, transform_indices = @transform_6, window_bounds = array<i64: 128, 8>}, {pipeline_mode = #tpu.pipeline_mode<synchronous>, transform_indices = @transform_7, window_bounds = array<i64: 1, 8>}, {transform_indices = @transform_8, window_bounds = array<i64: 16, 8>}]} {
    %c0 = arith.constant 0 : index
    %c0_0 = arith.constant 0 : index
    %0 = vector.load %arg1[%c0, %c0_0] : memref<16x128xbf16, #tpu.memory_space<vmem>>, vector<16x128xbf16>
    %c0_1 = arith.constant 0 : index
    %c0_2 = arith.constant 0 : index
    %1 = vector.load %arg2[%c0_1, %c0_2] : memref<16x128xbf16, #tpu.memory_space<vmem>>, vector<16x128xbf16>
    %2 = tpu.concatenate %0, %1 in 1 : vector<16x128xbf16>, vector<16x128xbf16> -> vector<16x256xbf16>
    %c0_3 = arith.constant 0 : index
    %c0_4 = arith.constant 0 : index
    %3 = vector.load %arg3[%c0_3, %c0_4] : memref<256x256xbf16, #tpu.memory_space<vmem>>, vector<256x256xbf16>
    %cst = arith.constant dense<0.000000e+00> : vector<16x256xf32>
    %4 = tpu.matmul %2, %3, %cst {dimension_numbers = #tpu.dot_dimension_numbers<[1], [0], [0], [1], [0, 0, 1, 1], [], []>} : vector<16x256xbf16>, vector<256x256xbf16>, vector<16x256xf32> -> vector<16x256xf32>
    %c0_5 = arith.constant 0 : index
    %c0_6 = arith.constant 0 : index
    %5 = vector.load %arg4[%c0_5, %c0_6] : memref<1x256xf32, #tpu.memory_space<vmem>>, vector<1x256xf32>
    %6 = vector.broadcast %5 : vector<1x256xf32> to vector<16x256xf32>
    %7 = arith.addf %4, %6 : vector<16x256xf32>
    %cst_7 = arith.constant 0.000000e+00 : f32
    %8 = vector.broadcast %cst_7 : f32 to vector<16x256xf32>
    %9 = arith.maximumf %7, %8 : vector<16x256xf32>
    %10 = vector.extract_strided_slice %9 {offsets = [0, 0], sizes = [16, 128], strides = [1, 1]} : vector<16x256xf32> to vector<16x128xf32>
    %11 = vector.extract_strided_slice %9 {offsets = [0, 128], sizes = [16, 128], strides = [1, 1]} : vector<16x256xf32> to vector<16x128xf32>
    %12 = arith.addf %10, %11 : vector<16x128xf32>
    %13 = arith.truncf %12 : vector<16x128xf32> to vector<16x128xbf16>
    %c0_8 = arith.constant 0 : index
    %c0_9 = arith.constant 0 : index
    %14 = vector.load %arg5[%c0_8, %c0_9] : memref<128x128xbf16, #tpu.memory_space<vmem>>, vector<128x128xbf16>
    %cst_10 = arith.constant dense<0.000000e+00> : vector<16x128xf32>
    %15 = tpu.matmul %13, %14, %cst_10 {dimension_numbers = #tpu.dot_dimension_numbers<[1], [0], [0], [1], [0, 0, 1, 1], [], []>} : vector<16x128xbf16>, vector<128x128xbf16>, vector<16x128xf32> -> vector<16x128xf32>
    %c0_11 = arith.constant 0 : index
    %c0_12 = arith.constant 0 : index
    %16 = vector.load %arg6[%c0_11, %c0_12] : memref<1x128xf32, #tpu.memory_space<vmem>>, vector<1x128xf32>
    %17 = vector.broadcast %16 : vector<1x128xf32> to vector<16x128xf32>
    %18 = arith.addf %15, %17 : vector<16x128xf32>
    %cst_13 = arith.constant 0.000000e+00 : f32
    %19 = vector.broadcast %cst_13 : f32 to vector<16x128xf32>
    %20 = arith.maximumf %18, %19 : vector<16x128xf32>
    %21 = arith.truncf %20 : vector<16x128xf32> to vector<16x128xbf16>
    %c0_14 = arith.constant 0 : index
    %c0_15 = arith.constant 0 : index
    %22 = vector.load %arg7[%c0_14, %c0_15] : memref<128x8xbf16, #tpu.memory_space<vmem>>, vector<128x8xbf16>
    %cst_16 = arith.constant dense<0.000000e+00> : vector<16x8xf32>
    %23 = tpu.matmul %21, %22, %cst_16 {dimension_numbers = #tpu.dot_dimension_numbers<[1], [0], [0], [1], [0, 0, 1, 1], [], []>} : vector<16x128xbf16>, vector<128x8xbf16>, vector<16x8xf32> -> vector<16x8xf32>
    %c0_17 = arith.constant 0 : index
    %c0_18 = arith.constant 0 : index
    %24 = vector.load %arg8[%c0_17, %c0_18] : memref<1x8xf32, #tpu.memory_space<vmem>>, vector<1x8xf32>
    %25 = vector.broadcast %24 : vector<1x8xf32> to vector<16x8xf32>
    %26 = arith.addf %23, %25 : vector<16x8xf32>
    %27 = arith.truncf %26 : vector<16x8xf32> to vector<16x8xbf16>
    %c0_19 = arith.constant 0 : index
    %c0_20 = arith.constant 0 : index
    %28 = vector.load %arg9[%c0_19, %c0_20] : memref<16x8xbf16, #tpu.memory_space<vmem>>, vector<16x8xbf16>
    tpu.vector_store %arg9[%c0_19, %c0_20], %27 {strides = array<i32>} : memref<16x8xbf16, #tpu.memory_space<vmem>>, vector<16x8xbf16>,
    return
  }
  func.func @transform_0(%arg0: i32) -> (i32, i32) {
    %c0_i32 = arith.constant 0 : i32
    %c0_i32_0 = arith.constant 0 : i32
    return %arg0, %c0_i32 : i32, i32
  }
  func.func @transform_1(%arg0: i32) -> (i32, i32) {
    %c0_i32 = arith.constant 0 : i32
    %c0_i32_0 = arith.constant 0 : i32
    return %arg0, %c0_i32 : i32, i32
  }
  func.func @transform_2(%arg0: i32) -> (i32, i32) {
    %c0_i32 = arith.constant 0 : i32
    %c0_i32_0 = arith.constant 0 : i32
    %c0_i32_1 = arith.constant 0 : i32
    return %c0_i32, %c0_i32_0 : i32, i32
  }
  func.func @transform_3(%arg0: i32) -> (i32, i32) {
    %c0_i32 = arith.constant 0 : i32
    %c0_i32_0 = arith.constant 0 : i32
    %c0_i32_1 = arith.constant 0 : i32
    return %c0_i32, %c0_i32_0 : i32, i32
  }
  func.func @transform_4(%arg0: i32) -> (i32, i32) {
    %c0_i32 = arith.constant 0 : i32
    %c0_i32_0 = arith.constant 0 : i32
    %c0_i32_1 = arith.constant 0 : i32
    return %c0_i32, %c0_i32_0 : i32, i32
  }
  func.func @transform_5(%arg0: i32) -> (i32, i32) {
    %c0_i32 = arith.constant 0 : i32
    %c0_i32_0 = arith.constant 0 : i32
    %c0_i32_1 = arith.constant 0 : i32
    return %c0_i32, %c0_i32_0 : i32, i32
  }
  func.func @transform_6(%arg0: i32) -> (i32, i32) {
    %c0_i32 = arith.constant 0 : i32
    %c0_i32_0 = arith.constant 0 : i32
    %c0_i32_1 = arith.constant 0 : i32
    return %c0_i32, %c0_i32_0 : i32, i32
  }
  func.func @transform_7(%arg0: i32) -> (i32, i32) {
    %c0_i32 = arith.constant 0 : i32
    %c0_i32_0 = arith.constant 0 : i32
    %c0_i32_1 = arith.constant 0 : i32
    return %c0_i32, %c0_i32_0 : i32, i32
  }
  func.func @transform_8(%arg0: i32) -> (i32, i32) {
    %c0_i32 = arith.constant 0 : i32
    %c0_i32_0 = arith.constant 0 : i32
    return %arg0, %c0_i32 : i32, i32
  }
}

</mosaic_0001>

<bundles_post_ra>
// kernel: tpu_custom_call.1
= control target key start
LH: loop header
LB: loop body
LE: loop exit
PB: predicated region body
PF: predicated region fallthrough
CT: control target
= control target key end

     0   :  { %13 = vsyncpa [#allocation3], 0  ;;  %s965_s0 = inlined_call_operand.vmem [shape: bf16[16,128], index: 0, kind: input, shape index: {}]   ;;  %s966_s1 = inlined_call_operand.vmem [shape: bf16[16,128], index: 1, kind: input, shape index: {}]   ;;  %s967_s2 = inlined_call_operand.hbm [shape: bf16[256,256], index: 2, kind: input, shape index: {}]   ;;  %s968_s3 = inlined_call_operand.vmem [shape: f32[1,256], index: 3, kind: input, shape index: {}]   ;;  %s969_s4 = inlined_call_operand.vmem [shape: bf16[128,128], index: 4, kind: input, shape index: {}]   ;;  %s970_s5 = inlined_call_operand.hbm [shape: f32[1,128], index: 5, kind: input, shape index: {}]   ;;  %s971_s6 = inlined_call_operand.vmem [shape: bf16[128,8], index: 6, kind: input, shape index: {}]   ;;  %s972_s7 = inlined_call_operand.vmem [shape: f32[1,8], index: 7, kind: input, shape index: {}]   ;;  %s973_s8 = inlined_call_operand.vmem [shape: bf16[16,8], index: 8, kind: output, shape index: {}]  }
   0x1   :  { %14 = vsyncpa [#allocation5], 0  ;;  %s804_s27 = smov [#allocation2]   ;;  %s756_s9 = scalar_lea.hbm %s967_s2, 4096 }
   0x2   :  { %s24_s28 = sshll.u32 %s804_s27, 4  ;;  %p757_p0 = scmp.ne.s32.totalorder %s967_s2, %s756_s9  ;;  %s25_s28 = int_to_ptr.vmem [resolvable:$true] %s24_s28 }
   0x3   :  { %p760_p1 = scmp.lt.u32.totalorder %s756_s9, %s967_s2 }
   0x5   :  { %p762_p2 = pnand %p760_p1, %p757_p0 }
   0x7   :  { %765 = shalt.err (!%p762_p2)
}
   0x8   :  { %s766_s14 = scalar_lea.vmem %s25_s28, 4096  ;;  %p771_p4 = scmp.lt.s32.totalorder %s25_s28, %s25_s28 }
   0x9   :  { %p767_p3 = scmp.ne.s32.totalorder %s25_s28, %s766_s14  ;;  %p772_p5 = scmp.lt.s32.totalorder %s766_s14, %s766_s14 }
   0xb   :  { %p773_p6 = por %p772_p5, %p771_p4 }
   0xd   :  { %p774_p7 = pnand %p773_p6, %p767_p3 }
   0xf   :  { %777 = shalt.err (!%p774_p7)
}
  0x10   :  { %s805_s15 = smov 128   ;;  %s806_s16 = smov 8  }
  0x11   :  { %30 = dma.hbm_to_vmem [thread:$0]  %s967_s2, 4096, %s25_s28, [#allocation3], %s805_s15, %s805_s15, %s806_s16  }
  0x12   :  { %s807_s19 = smov [#allocation4]   ;;  %s778_s23 = scalar_lea.hbm %s970_s5, 16 }
  0x13   :  { %s41_s20 = sshll.u32 %s807_s19, 4  ;;  %p779_p8 = scmp.ne.s32.totalorder %s970_s5, %s778_s23  ;;  %s42_s20 = int_to_ptr.vmem [resolvable:$true] %s41_s20 }
  0x14   :  { %p782_p9 = scmp.lt.u32.totalorder %s778_s23, %s970_s5 }
  0x16   :  { %p784_p10 = pnand %p782_p9, %p779_p8 }
  0x18   :  { %787 = shalt.err (!%p784_p10)
}
  0x19   :  { %s788_s29 = scalar_lea.vmem %s42_s20, 16  ;;  %s792_s2 = scalar_lea.vmem %s42_s20, 32 }
  0x1a   :  { %p789_p11 = scmp.ne.s32.totalorder %s42_s20, %s788_s29  ;;  %p793_p12 = scmp.lt.s32.totalorder %s42_s20, %s42_s20 }
  0x1b   :  { %p794_p13 = scmp.lt.s32.totalorder %s792_s2, %s788_s29 }
  0x1d   :  { %p795_p0 = por %p794_p13, %p793_p12 }
  0x1f   :  { %p796_p1 = pnand %p795_p0, %p789_p11 }
  0x21   :  { %799 = shalt.err (!%p796_p1)
}
  0x22   :  { %44 = dma.hbm_to_vmem [thread:$0]  %s970_s5, 16, %s42_s20, [#allocation5]  }
  0x23   :  { %800 = dma.done.wait [#allocation3], 4096  }
  0x24   :  { %801 = vsyncadd [#allocation3], 4294963200 }
  0x25   :  { %802 = dma.done.wait [#allocation5], 16  }
  0x26   :  { %803 = vsyncadd [#allocation5], 4294967280  ;;  %v808_v0 = vmov 0.0   ;;  %v690_v1 = vld [vmem:[#allocation2 + $0x4] ss:$8 sps:$4 sm:$0xff]   ;;  %v742_v21 = vld [vmem:[%s969_s4 + $0x10] sm:$0xff]   ;;  %v106_v43 = vlaneseq }
  0x27   :  { %644 = vmatprep.subr.bf16.mxu1 %v808_v0  ;;  %v692_v2 = vld [vmem:[#allocation2] ss:$8 sps:$4 sm:$0xff]   ;;  %276 = vmatprep.subr.bf16.mxu0 %v690_v1  ;;  %v693_v3 = vld [vmem:[#allocation2 + $0x14] ss:$8 sps:$4 sm:$0xff]   ;;  %v695_v4 = vld [vmem:[#allocation2 + $0x10] ss:$8 sps:$4 sm:$0xff]  }
  0x28   :  { %277 = vmatpush1.bf16.msra.mxu0 %v692_v2  ;;  %v696_v5 = vld [vmem:[#allocation2 + $0x24] ss:$8 sps:$4 sm:$0xff]   ;;  %v698_v6 = vld [vmem:[#allocation2 + $0x20] ss:$8 sps:$4 sm:$0xff]   ;;  %v699_v7 = vld [vmem:[#allocation2 + $0x34] ss:$8 sps:$4 sm:$0xff]  }
  0x29   :  { %278 = vmatprep.subr.bf16.mxu0 %v693_v3  ;;  %v701_v8 = vld [vmem:[#allocation2 + $0x30] ss:$8 sps:$4 sm:$0xff]   ;;  %v702_v9 = vld [vmem:[#allocation2 + $0x44] ss:$8 sps:$4 sm:$0xff]   ;;  %v704_v10 = vld [vmem:[#allocation2 + $0x40] ss:$8 sps:$4 sm:$0xff]  }
  0x2a   :  { %v705_v11 = vld [vmem:[#allocation2 + $0x54] ss:$8 sps:$4 sm:$0xff]   ;;  %v707_v12 = vld [vmem:[#allocation2 + $0x50] ss:$8 sps:$4 sm:$0xff]   ;;  %v708_v13 = vld [vmem:[#allocation2 + $0x64] ss:$8 sps:$4 sm:$0xff]  }
  0x2b   :  { %v710_v14 = vld [vmem:[#allocation2 + $0x60] ss:$8 sps:$4 sm:$0xff]   ;;  %v711_v16 = vld [vmem:[#allocation2 + $0x74] ss:$8 sps:$4 sm:$0xff]   ;;  %v713_v19 = vld [vmem:[#allocation2 + $0x70] ss:$8 sps:$4 sm:$0xff]  }
  0x2c   :  { %279 = vmatpush1.bf16.msra.mxu0 %v695_v4  ;;  %v738_v15 = vld [vmem:[%s966_s1] sm:$0xff]   ;;  %v741_v18 = vld [vmem:[%s969_s4 + $0x8] sm:$0xff]   ;;  %v717_v23 = vld [vmem:[#allocation2 + $0x94] ss:$8 sps:$4 sm:$0xff]   ;;  %vm809_vm0 = vmmov 0   ;;  %v107_v44 = vshrl.u32 %v106_v43, 7 }
  0x2d   :  { %280 = vmatprep.subr.bf16.mxu0 %v696_v5  ;;  %308 = vmatprep.mubr.bf16.mxu0 %v738_v15  ;;  %v740_v17 = vld [vmem:[%s969_s4] sm:$0xff]   ;;  %v743_v24 = vld [vmem:[%s969_s4 + $0x18] sm:$0xff]   ;;  %v745_v40 = vld [vmem:[%s969_s4 + $0x28] sm:$0xff]   ;;  %vm561_vm1 = vcmask 60416  }
  0x2e   :  { %645 = vmatpush3.bf16.msra.mxu1 %v740_v17  ;;  %v714_v20 = vld [vmem:[#allocation2 + $0x84] ss:$8 sps:$4 sm:$0xff]   ;;  %v716_v22 = vld [vmem:[#allocation2 + $0x80] ss:$8 sps:$4 sm:$0xff]   ;;  %v719_v25 = vld [vmem:[#allocation2 + $0x90] ss:$8 sps:$4 sm:$0xff]   ;;  %660 = vmatprep.mubr.msk.bf16.mxu1 %vm809_vm0, %v808_v0 }
  0x2f   :  { %646 = vmatprep.subr.bf16.mxu1 %v808_v0  ;;  %v720_v26 = vld [vmem:[#allocation2 + $0xa4] ss:$8 sps:$4 sm:$0xff]   ;;  %v722_v28 = vld [vmem:[#allocation2 + $0xa0] ss:$8 sps:$4 sm:$0xff]   ;;  %v723_v29 = vld [vmem:[#allocation2 + $0xb4] ss:$8 sps:$4 sm:$0xff]  }
  0x30   :  { %281 = vmatpush1.bf16.msra.mxu0 %v698_v6  ;;  %v744_v27 = vld [vmem:[%s969_s4 + $0x20] sm:$0xff]   ;;  %v725_v30 = vld [vmem:[#allocation2 + $0xb0] ss:$8 sps:$4 sm:$0xff]   ;;  %v729_v33 = vld [vmem:[#allocation2 + $0xd4] ss:$8 sps:$4 sm:$0xff]   ;;  %v108_v45 = vsub.s32 0, %v107_v44 }
  0x31   :  { %282 = vmatprep.subr.bf16.mxu0 %v699_v7  ;;  %v726_v31 = vld [vmem:[#allocation2 + $0xc4] ss:$8 sps:$4 sm:$0xff]   ;;  %v728_v32 = vld [vmem:[#allocation2 + $0xc0] ss:$8 sps:$4 sm:$0xff]   ;;  %v731_v34 = vld [vmem:[#allocation2 + $0xd0] ss:$8 sps:$4 sm:$0xff]  }
  0x32   :  { %647 = vmatpush3.bf16.msra.mxu1 %v741_v18  ;;  %v732_v35 = vld [vmem:[#allocation2 + $0xe4] ss:$8 sps:$4 sm:$0xff]   ;;  %v734_v36 = vld [vmem:[#allocation2 + $0xe0] ss:$8 sps:$4 sm:$0xff]   ;;  %v735_v37 = vld [vmem:[#allocation2 + $0xf4] ss:$8 sps:$4 sm:$0xff]  }
  0x33   :  { %648 = vmatprep.subr.bf16.mxu1 %v808_v0  ;;  %v737_v38 = vld [vmem:[#allocation2 + $0xf0] ss:$8 sps:$4 sm:$0xff]   ;;  %v739_v39 = vld [vmem:[%s965_s0] sm:$0xff]   ;;  %v112_v47 = vsub.s32 1, %v107_v44  ;;  %v749_v3 = vld [vmem:[%s971_s6 + $0x8] sm:$0xff]  }
  0x34   :  { %283 = vmatpush1.bf16.msra.mxu0 %v701_v8  ;;  %v746_v41 = vld [vmem:[%s969_s4 + $0x30] sm:$0xff]   ;;  %v747_v42 = vld [vmem:[%s969_s4 + $0x38] sm:$0xff]   ;;  %v104_v46 = vld [vmem:[%s968_s3] sm:$0x3] }
  0x35   :  { %284 = vmatprep.subr.bf16.mxu0 %v702_v9  ;;  %v109_v48 = vrot.slane %v104_v46, %v108_v45  ;;  %v113_v49 = vrot.slane %v104_v46, %v112_v47  ;;  %v748_v1 = vld [vmem:[%s971_s6] sm:$0xff]   ;;  %v750_v4 = vld [vmem:[%s971_s6 + $0x10] sm:$0xff]   ;;  %v751_v5 = vld [vmem:[%s971_s6 + $0x18] sm:$0xff]  }
  0x36   :  { %649 = vmatpush3.bf16.msra.mxu1 %v742_v21  ;;  %v752_v6 = vld [vmem:[%s971_s6 + $0x20] sm:$0xff]   ;;  %v753_v7 = vld [vmem:[%s971_s6 + $0x28] sm:$0xff]   ;;  %v754_v8 = vld [vmem:[%s971_s6 + $0x30] sm:$0xff]  }
  0x37   :  { %650 = vmatprep.subr.bf16.mxu1 %v808_v0  ;;  %v755_v9 = vld [vmem:[%s971_s6 + $0x38] sm:$0xff]  }
  0x38   :  { %285 = vmatpush1.bf16.msra.mxu0 %v704_v10  ;;  %v604_v10 = vld [vmem:[#allocation4] ss:$0 sm:$0xff] }
  0x39   :  { %286 = vmatprep.subr.bf16.mxu0 %v705_v11 }
  0x3a   :  { %651 = vmatpush3.bf16.msra.mxu1 %v743_v24 }
  0x3b   :  { %652 = vmatprep.subr.bf16.mxu1 %v808_v0 }
  0x3c   :  { %287 = vmatpush1.bf16.msra.mxu0 %v707_v12 }
  0x3d   :  { %288 = vmatprep.subr.bf16.mxu0 %v708_v13 }
  0x3e   :  { %653 = vmatpush3.bf16.msra.mxu1 %v744_v27 }
  0x3f   :  { %654 = vmatprep.subr.bf16.mxu1 %v808_v0 }
  0x40   :  { %289 = vmatpush1.bf16.msra.mxu0 %v710_v14 }
  0x41   :  { %290 = vmatprep.subr.bf16.mxu0 %v711_v16 }
  0x42   :  { %655 = vmatpush3.bf16.msra.mxu1 %v745_v40 }
  0x43   :  { %656 = vmatprep.subr.bf16.mxu1 %v808_v0 }
  0x44   :  { %291 = vmatpush1.bf16.msra.mxu0 %v713_v19 }
  0x45   :  { %292 = vmatprep.subr.bf16.mxu0 %v714_v20 }
  0x46   :  { %657 = vmatpush3.bf16.msra.mxu1 %v746_v41 }
  0x47   :  { %658 = vmatprep.subr.bf16.mxu1 %v808_v0 }
  0x48   :  { %293 = vmatpush1.bf16.msra.mxu0 %v716_v22 }
  0x49   :  { %294 = vmatprep.subr.bf16.mxu0 %v717_v23 }
  0x4a   :  { %659 = vmatpush3.bf16.msra.mxu1 %v747_v42 }
  0x4b   :  { %664 = vmatprep.subr.bf16.mxu1 %v808_v0 }
  0x4c   :  { %295 = vmatpush1.bf16.msra.mxu0 %v719_v25 }
  0x4d   :  { %296 = vmatprep.subr.bf16.mxu0 %v720_v26 }
  0x50   :  { %297 = vmatpush1.bf16.msra.mxu0 %v722_v28 }
  0x51   :  { %298 = vmatprep.subr.bf16.mxu0 %v723_v29 }
  0x54   :  { %299 = vmatpush1.bf16.msra.mxu0 %v725_v30 }
  0x55   :  { %300 = vmatprep.subr.bf16.mxu0 %v726_v31 }
  0x58   :  { %301 = vmatpush1.bf16.msra.mxu0 %v728_v32 }
  0x59   :  { %302 = vmatprep.subr.bf16.mxu0 %v729_v33 }
  0x5c   :  { %303 = vmatpush1.bf16.msra.mxu0 %v731_v34 }
  0x5d   :  { %304 = vmatprep.subr.bf16.mxu0 %v732_v35 }
  0x60   :  { %305 = vmatpush1.bf16.msra.mxu0 %v734_v36 }
  0x61   :  { %306 = vmatprep.subr.bf16.mxu0 %v735_v37 }
  0x64   :  { %307 = vmatpush1.bf16.msra.mxu0 %v737_v38 }
  0x67   :  { %309 = vmatmul.mubr.bf16.vlgmr.msra.gmra.mrb[0].mxu0 %v739_v39 }
 0x13a   :  { %v310_v50 = vpop.f32.mrb[0].mxu0 }
 0x13b   :  { %v311_v51 = vadd.f32 %v310_v50, %v109_v48  ;;  %v312_v52 = vpop.f32.mrb[1].mxu0 }
 0x13c   :  { %v313_v53 = vadd.f32 %v312_v52, %v113_v49  ;;  %v314_v54 = vpop.f32.mrb[2].mxu0 }
 0x13d   :  { %v319_v55 = vmax.f32 %v311_v51, 0.0  ;;  %v315_v56 = vadd.f32 %v314_v54, %v109_v48  ;;  %v316_v57 = vpop.f32.mrb[3].mxu0 }
 0x13e   :  { %v320_v58 = vmax.f32 %v313_v53, 0.0  ;;  %v317_v59 = vadd.f32 %v316_v57, %v113_v49 }
 0x13f   :  { %v321_v60 = vmax.f32 %v315_v56, 0.0 }
 0x140   :  { %v323_v61 = vadd.f32 %v320_v58, %v319_v55  ;;  %v322_v62 = vmax.f32 %v317_v59, 0.0 }
 0x142   :  { %v324_v63 = vadd.f32 %v322_v62, %v321_v60 }
 0x144   :  { %v325_v2 = vpack.c.bf16 %v324_v63, %v323_v61 }
 0x146   :  { %661 = vmatmul.mubr.bf16.vlgmr.msra.gmra.mrb[0].mxu1 %v325_v2 }
 0x147   :  { %665 = vmatpush3.bf16.msra.mxu1 %v748_v1  ;;  %680 = vmatprep.mubr.msk.bf16.mxu1 %vm809_vm0, %v808_v0 }
 0x148   :  { %666 = vmatprep.subr.bf16.mxu1 %v808_v0 }
 0x14b   :  { %667 = vmatpush3.bf16.msra.mxu1 %v749_v3 }
 0x14c   :  { %668 = vmatprep.subr.bf16.mxu1 %v808_v0 }
 0x14f   :  { %669 = vmatpush3.bf16.msra.mxu1 %v750_v4 }
 0x150   :  { %670 = vmatprep.subr.bf16.mxu1 %v808_v0 }
 0x153   :  { %671 = vmatpush3.bf16.msra.mxu1 %v751_v5 }
 0x154   :  { %672 = vmatprep.subr.bf16.mxu1 %v808_v0 }
 0x157   :  { %673 = vmatpush3.bf16.msra.mxu1 %v752_v6 }
 0x158   :  { %674 = vmatprep.subr.bf16.mxu1 %v808_v0 }
 0x15b   :  { %675 = vmatpush3.bf16.msra.mxu1 %v753_v7 }
 0x15c   :  { %676 = vmatprep.subr.bf16.mxu1 %v808_v0 }
 0x15f   :  { %677 = vmatpush3.bf16.msra.mxu1 %v754_v8 }
 0x160   :  { %678 = vmatprep.subr.bf16.mxu1 %v808_v0  ;;  %v613_v0 = vld [vmem:[%s972_s7] ss:$0 sm:$0xff] }
 0x163   :  { %679 = vmatpush3.bf16.msra.mxu1 %v755_v9 }
 0x219   :  { %v431_v11 = vpop.f32.mrb[0].mxu1 }
 0x21a   :  { %v432_v12 = vadd.f32 %v604_v10, %v431_v11  ;;  %v662_v13 = vpop.f32.mrb[1].mxu1 }
 0x21b   :  { %v434_v14 = vpop.f32.mrb[2].mxu1 }
 0x21c   :  { %v435_v15 = vadd.f32 %v604_v10, %v434_v14  ;;  %v663_v16 = vpop.f32.mrb[3].mxu1  ;;  %v438_v17 = vmax.f32 %v432_v12, 0.0 }
 0x21e   :  { %v439_v18 = vmax.f32 %v435_v15, 0.0 }
 0x220   :  { %v440_v19 = vpack.c.bf16 %v439_v18, %v438_v17 }
 0x222   :  { %681 = vmatmul.mubr.bf16.vlgmr.msra.gmra.mrb[4].mxu1 %v440_v19 }
 0x2f5   :  { %v546_v20 = vpop.f32.mrb[4].mxu1 }
 0x2f6   :  { %v547_v21 = vadd.f32 %v613_v0, %v546_v20  ;;  %v682_v22 = vpop.f32.mrb[5].mxu1 }
 0x2f7   :  { %v549_v23 = vpop.f32.mrb[6].mxu1 }
 0x2f8   :  { %v624_v24 = vpack.c.bf16 %v547_v21, %v547_v21  ;;  %v550_v25 = vadd.f32 %v613_v0, %v549_v23  ;;  %v683_v26 = vpop.f32.mrb[7].mxu1 }
 0x2fa   :  { %562 = vst.msk [vmem:[%s973_s8] sm:$0xf] %vm561_vm1, %v624_v24  ;;  %v625_v27 = vpack.c.bf16 %v550_v25, %v550_v25 }
 0x2fc   :  { %563 = vst.msk [vmem:[%s973_s8 + $0x4] sm:$0xf] %vm561_vm1, %v625_v27 }
 0x2fd   :  { %568 = vsyncpa [#allocation3], 1 }
 0x2fe   :  { %569 = vsyncpa [#allocation5], 1 }

</bundles_post_ra>
